<compile_context>
chip_gen: v7x
topology: tpu7x:2x2x1
jax: 0.10.0
libtpu: 0.0.40
codegen_flags: <defaults>
</compile_context>

<pallas_src>
import jax
import jax.numpy as jnp
from jax.experimental import pallas as pl
from jax.experimental.pallas import tpu as pltpu

LANE = 128
TARGET_BLOCK_BYTES = 6 * 1024 * 1024   # 4 buffers x 6 MiB = 24 MiB < 32 MiB scoped VMEM
MIN_STEPS = 4                          # keep both v7x TensorCores fed on medium/large inputs


def _mish_kernel(x_ref, o_ref):
    x = x_ref[...].astype(jnp.float32)
    # mish(x) = x * tanh(softplus(x)), softplus threshold=20 semantics.
    # tanh(log1p(e)) = (e^2 + 2e) / (e^2 + 2e + 2); the min(x,20) clamp keeps
    # e*e finite in f32, and for x > 20 the ratio rounds to exactly 1.0f so no
    # extra select is needed (single EUP exp + one divide per element).
    e = jnp.exp(jnp.minimum(x, 20.0))
    t = e * (e + 2.0)
    o_ref[...] = (x * (t / (t + 2.0))).astype(o_ref.dtype)


def _mish_jnp(x):
    """Same math in plain jnp, used only for the <128-element ragged tail."""
    xf = x.astype(jnp.float32)
    e = jnp.exp(jnp.minimum(xf, 20.0))
    t = e * (e + 2.0)
    return (xf * (t / (t + 2.0))).astype(x.dtype)


def _run_slab(slab):
    """Run the Mish kernel over a lane-dense 2-D slab (rows, width%128==0)."""
    rows, width = slab.shape
    dtype = slab.dtype
    itemsize = jnp.dtype(dtype).itemsize
    # dtype-aware sublane packing: 8 rows/vreg f32, 16 bf16, 32 int8/fp8.
    pack = max(8, 32 // itemsize)

    tile_rows = TARGET_BLOCK_BYTES // (width * itemsize)
    tile_rows = max(pack, (tile_rows // pack) * pack)

    # Keep >= MIN_STEPS grid steps when the slab is large enough so the
    # "parallel" axis can be split across both TensorCores on v7x (no-op on
    # single-TC v5e/v6e, costing only ~1 us of extra step overhead there).
    if rows >= MIN_STEPS * pack:
        cap = max(pack, (pl.cdiv(rows, MIN_STEPS) // pack) * pack)
        tile_rows = min(tile_rows, cap)

    if tile_rows >= rows:
        tile_rows = rows                       # full second-to-last dim is always legal
        grid = (1,)
    else:
        grid = (pl.cdiv(rows, tile_rows),)     # ragged last block masked by Pallas

    return pl.pallas_call(
        _mish_kernel,
        out_shape=jax.ShapeDtypeStruct((rows, width), dtype),
        grid_spec=pltpu.PrefetchScalarGridSpec(
            num_scalar_prefetch=0,
            grid=grid,
            in_specs=[pl.BlockSpec((tile_rows, width), lambda i: (i, 0))],
            out_specs=pl.BlockSpec((tile_rows, width), lambda i: (i, 0)),
        ),
        compiler_params=pltpu.CompilerParams(
            dimension_semantics=(pltpu.PARALLEL,),   # shard steps across TCs on v7x
            vmem_limit_bytes=32 * 1024 * 1024,
        ),
    )(slab)


def mish_pallas(x):
    """Elementwise Mish on an arbitrary-shaped array via a Pallas TPU kernel."""
    orig_shape = x.shape
    n = x.size
    flat = x.reshape(-1)

    if n < LANE:
        # Too small for a lane-aligned block; plain jnp is cheapest.
        return _mish_jnp(flat).reshape(orig_shape)

    n_aligned = n - (n % LANE)
    # Widest lane-aligned last dim dividing the aligned prefix -> zero-copy reshape.
    width = LANE
    for cand in (1024, 512, 256):
        if n_aligned % cand == 0:
            width = cand
            break

    head_in = flat if n_aligned == n else flat[:n_aligned]
    head = _run_slab(head_in.reshape(n_aligned // width, width)).reshape(-1)

    if n_aligned == n:
        return head.reshape(orig_shape)

    # <128-element ragged tail: computed in plain jnp instead of padding and
    # re-slicing the whole array (avoids full-array pad/slice HBM copies).
    tail = _mish_jnp(flat[n_aligned:])
    return jnp.concatenate([head, tail]).reshape(orig_shape)


def mish_ref(x):
    xf = x.astype(jnp.float32)
    sp = jnp.where(xf > 20.0, xf, jnp.log1p(jnp.exp(jnp.minimum(xf, 20.0))))
    return (xf * jnp.tanh(sp)).astype(x.dtype)


if __name__ == "__main__":
    key = jax.random.PRNGKey(0)

    # NCHW input, matching the PyTorch module's conv-style input.
    x = jax.random.normal(key, (2, 4, 16, 16), dtype=jnp.float32) * 3.0
    y = mish_pallas(x)
    jax.block_until_ready(y)
    assert y.shape == x.shape and y.dtype == x.dtype
    assert jnp.allclose(y, mish_ref(x), atol=1e-5, rtol=1e-5)

    # Multi-step grid path (exercises the >= MIN_STEPS split used on v7x).
    k1, k2 = jax.random.split(key)
    x_big = jax.random.normal(k1, (256, 1024), dtype=jnp.float32) * 3.0
    y_big = mish_pallas(x_big)
    jax.block_until_ready(y_big)
    assert jnp.allclose(y_big, mish_ref(x_big), atol=1e-5, rtol=1e-5)

    # Unaligned total size path (128-aligned prefix via kernel + jnp tail).
    x_odd = jax.random.normal(k2, (5, 97), dtype=jnp.float32) * 3.0
    y_odd = mish_pallas(x_odd)
    jax.block_until_ready(y_odd)
    assert y_odd.shape == x_odd.shape
    assert jnp.allclose(y_odd, mish_ref(x_odd), atol=1e-5, rtol=1e-5)

    # TODO(synk): backward pass (dace_module(backward=True)) not implemented; forward only.
    print("KERNEL_OK")
</pallas_src>

<mosaic_0001>
module attributes {stable_mosaic.version = 11 : i64} {
  func.func @_mish_kernel(%arg0: i32, %arg1: memref<2x1024xf32, #tpu.memory_space<vmem>>, %arg2: memref<2x1024xf32, #tpu.memory_space<vmem>>) attributes {dimension_semantics = [#tpu.dimension_semantics<parallel>], iteration_bounds = array<i64: 1>, scalar_prefetch = 0 : i64, scratch_operands = 0 : i64, tpu.core_type = #tpu.core_type<tc>, window_params = [{transform_indices = @transform_0, window_bounds = array<i64: 2, 1024>}, {transform_indices = @transform_1, window_bounds = array<i64: 2, 1024>}]} {
    %c0 = arith.constant 0 : index
    %c0_0 = arith.constant 0 : index
    %0 = vector.load %arg1[%c0, %c0_0] : memref<2x1024xf32, #tpu.memory_space<vmem>>, vector<2x1024xf32>
    %cst = arith.constant 2.000000e+01 : f32
    %1 = vector.broadcast %cst : f32 to vector<2x1024xf32>
    %2 = arith.minimumf %0, %1 : vector<2x1024xf32>
    %3 = math.exp %2 : vector<2x1024xf32>
    %cst_1 = arith.constant 2.000000e+00 : f32
    %4 = vector.broadcast %cst_1 : f32 to vector<2x1024xf32>
    %5 = arith.addf %3, %4 : vector<2x1024xf32>
    %6 = arith.mulf %3, %5 : vector<2x1024xf32>
    %cst_2 = arith.constant 2.000000e+00 : f32
    %7 = vector.broadcast %cst_2 : f32 to vector<2x1024xf32>
    %8 = arith.addf %6, %7 : vector<2x1024xf32>
    %9 = arith.divf %6, %8 : vector<2x1024xf32>
    %10 = arith.mulf %0, %9 : vector<2x1024xf32>
    %c0_3 = arith.constant 0 : index
    %c0_4 = arith.constant 0 : index
    %11 = vector.load %arg2[%c0_3, %c0_4] : memref<2x1024xf32, #tpu.memory_space<vmem>>, vector<2x1024xf32>
    tpu.vector_store %arg2[%c0_3, %c0_4], %10 {strides = array<i32>} : memref<2x1024xf32, #tpu.memory_space<vmem>>, vector<2x1024xf32>,
    return
  }
  func.func @transform_0(%arg0: i32) -> (i32, i32) {
    %c0_i32 = arith.constant 0 : i32
    %c0_i32_0 = arith.constant 0 : i32
    return %arg0, %c0_i32 : i32, i32
  }
  func.func @transform_1(%arg0: i32) -> (i32, i32) {
    %c0_i32 = arith.constant 0 : i32
    %c0_i32_0 = arith.constant 0 : i32
    return %arg0, %c0_i32 : i32, i32
  }
}

</mosaic_0001>

<bundles_post_ra>
// kernel: tpu_custom_call.1
= control target key start
LH: loop header
LB: loop body
LE: loop exit
PB: predicated region body
PF: predicated region fallthrough
CT: control target
= control target key end

     0   :  { %6 = vsyncpa [#allocation3], 0  ;;  %s152_s0 = inlined_call_operand.hbm [shape: f32[2,1024], index: 0, kind: input, shape index: {}]   ;;  %s153_s1 = inlined_call_operand.hbm [shape: f32[2,1024], index: 1, kind: output, shape index: {}]  }
   0x1   :  { %7 = vsyncpa [#allocation4], 0  ;;  %s116_s6 = smov [#allocation2]   ;;  %s68_s10 = scalar_lea.hbm %s152_s0, 256 }
   0x2   :  { %s14_s7 = sshll.u32 %s116_s6, 4  ;;  %p69_p0 = scmp.ne.s32.totalorder %s152_s0, %s68_s10  ;;  %s15_s7 = int_to_ptr.vmem [resolvable:$true] %s14_s7 }
   0x3   :  { %p72_p1 = scmp.lt.u32.totalorder %s68_s10, %s152_s0 }
   0x5   :  { %p74_p2 = pnand %p72_p1, %p69_p0 }
   0x7   :  { %77 = shalt.err (!%p74_p2)
}
   0x8   :  { %s78_s15 = scalar_lea.vmem %s15_s7, 256  ;;  %p83_p4 = scmp.lt.s32.totalorder %s15_s7, %s15_s7 }
   0x9   :  { %p79_p3 = scmp.ne.s32.totalorder %s15_s7, %s78_s15  ;;  %p84_p5 = scmp.lt.s32.totalorder %s78_s15, %s78_s15 }
   0xb   :  { %p85_p6 = por %p84_p5, %p83_p4 }
   0xd   :  { %p86_p7 = pnand %p85_p6, %p79_p3 }
   0xf   :  { %89 = shalt.err (!%p86_p7)
}
  0x10   :  { %17 = dma.hbm_to_vmem [thread:$0]  %s152_s0, 256, %s15_s7, [#allocation3]  }
  0x11   :  { %112 = dma.done.wait [#allocation3], 256  }
  0x12   :  { %113 = vsyncadd [#allocation3], 4294967040  ;;  %v21_v0 = vld [vmem:[#allocation2] sm:$0xff]  ;;  %v22_v1 = vld [vmem:[#allocation2 + $0x8] sm:$0xff]  ;;  %s117_s0 = smov [#allocation5]  }
  0x13   :  { %v23_v2 = vmin.f32 %v21_v0, 20.0  ;;  %v24_v3 = vmin.f32 %v22_v1, 20.0  ;;  %s49_s18 = sshll.u32 %s117_s0, 4  ;;  %s50_s18 = int_to_ptr.vmem [resolvable:$true] %s49_s18 }
  0x14   :  { %s90_s19 = scalar_lea.vmem %s50_s18, 256  ;;  %p95_p9 = scmp.lt.s32.totalorder %s50_s18, %s50_s18 }
  0x15   :  { %v25_v4 = vmul.f32 1.442695, %v23_v2  ;;  %v27_v5 = vmul.f32 1.442695, %v24_v3  ;;  %p91_p8 = scmp.ne.s32.totalorder %s50_s18, %s90_s19  ;;  %p96_p10 = scmp.lt.s32.totalorder %s90_s19, %s90_s19 }
  0x17   :  { %60 = vpow2.f32 %v25_v4  ;;  %p97_p11 = por %p96_p10, %p95_p9 }
  0x18   :  { %62 = vpow2.f32 %v27_v5 }
  0x19   :  { %p98_p12 = pnand %p97_p11, %p91_p8 }
  0x21   :  { %v61_v6 = vpop.eup %60 }
  0x22   :  { %v63_v7 = vpop.eup %62  ;;  %v29_v8 = vadd.f32 2.0, %v61_v6 }
  0x23   :  { %v30_v9 = vadd.f32 2.0, %v63_v7 }
  0x24   :  { %v31_v10 = vmul.f32 %v61_v6, %v29_v8 }
  0x25   :  { %v32_v11 = vmul.f32 %v63_v7, %v30_v9 }
  0x26   :  { %v33_v12 = vadd.f32 2.0, %v31_v10 }
  0x27   :  { %v34_v13 = vadd.f32 2.0, %v32_v11 }
  0x28   :  { %64 = vrcp.f32 %v33_v12 }
  0x29   :  { %66 = vrcp.f32 %v34_v13 }
  0x32   :  { %v65_v14 = vpop.eup %64 }
  0x33   :  { %v67_v15 = vpop.eup %66  ;;  %v36_v16 = vmul.f32 %v65_v14, %v31_v10 }
  0x34   :  { %v38_v17 = vmul.f32 %v67_v15, %v32_v11 }
  0x35   :  { %v39_v18 = vmul.f32 %v36_v16, %v21_v0 }
  0x36   :  { %v40_v19 = vmul.f32 %v38_v17, %v22_v1 }
  0x37   :  { %41 = vst [vmem:[#allocation5] sm:$0xff] %v39_v18 }
  0x38   :  { %42 = vst [vmem:[#allocation5 + $0x8] sm:$0xff] %v40_v19 }
  0x39   :  { %101 = shalt.err (!%p98_p12)
}
  0x3a   :  { %s102_s22 = scalar_lea.hbm %s153_s1, 256 }
  0x3b   :  { %p103_p13 = scmp.ne.s32.totalorder %s153_s1, %s102_s22  ;;  %p106_p0 = scmp.lt.u32.totalorder %s102_s22, %s153_s1 }
  0x3d   :  { %p108_p1 = pnand %p106_p0, %p103_p13 }
  0x3f   :  { %111 = shalt.err (!%p108_p1)
}
  0x40   :  { %52 = dma.vmem_to_hbm [thread:$0]  %s50_s18, 256, %s153_s1, [#allocation4]  }
  0x41   :  { %114 = dma.done.wait [#allocation4], 256  }
  0x42   :  { %115 = vsyncadd [#allocation4], 4294967040 }
  0x43   :  { %56 = vsyncpa [#allocation3], 1 }
  0x44   :  { %57 = vsyncpa [#allocation4], 1 }

</bundles_post_ra>
